<compile_context>
chip_gen: v7x
topology: tpu7x:2x2x1
jax: 0.10.0
libtpu: 0.0.40
codegen_flags: <defaults>
</compile_context>

<pallas_src>
import jax
import jax.numpy as jnp
from jax.experimental import pallas as pl
from jax.experimental.pallas import tpu as pltpu
import numpy as np


def _attention_luong_kernel(w_ref, mask_ref, state_ref, ctx_ref):
    # w_ref:     (1, H)       Linear(H, 1, bias=False).weight
    # mask_ref:  (TB, 1, S)   attention mask rows (singleton middle dim keeps
    #                         trailing block dims == full array dims)
    # state_ref: (TB, S, H)   last_state rows for this batch tile
    # ctx_ref:   (TB, 1, H)   unbroadcast context vectors (output)
    state = state_ref[...].astype(jnp.float32)                 # (TB, S, H)
    mask = mask_ref[...][:, 0, :].astype(jnp.float32)          # (TB, S)
    w = w_ref[...].astype(jnp.float32)                         # (1, H)

    # Linear(H -> 1, no bias) on the masked state, with the mask factored out
    # of the H-reduction so the (TB, S, H) masked temporary never exists:
    #   scores = mask * <state, w>_H
    scores = mask * jnp.sum(state * w[:, None, :], axis=-1)    # (TB, S)

    # Numerically stable softmax over S.  Masked positions keep a raw score
    # of 0 (matching the PyTorch reference, which does not mask the softmax).
    m = jnp.max(scores, axis=-1, keepdims=True)                # (TB, 1)
    e = jnp.exp(scores - m)                                    # (TB, S)
    denom = jnp.sum(e, axis=-1, keepdims=True)                 # (TB, 1)

    # ctx = sum_s softmax_s * (mask_s * state_s); fold the mask into the
    # softmax numerator and apply 1/denom once to the small (TB, H) result.
    p = e * mask                                               # (TB, S)
    ctx = jnp.sum(state * p[:, :, None], axis=1)               # (TB, H)
    ctx = ctx * pl.reciprocal(denom, approx=False)             # (TB, H)
    ctx_ref[...] = ctx[:, None, :].astype(ctx_ref.dtype)       # (TB, 1, H)


def _round_up(x, m):
    return ((x + m - 1) // m) * m


def _cdiv(a, b):
    return -(-a // b)


def _row_vmem_bytes(S, H, in_itemsize):
    """Per-batch-row VMEM footprint: double-buffered state/mask/ctx blocks
    (accounting for (8,128) tile padding of the trailing dims) plus one
    transient f32 row for the fused multiply-reduce temporaries."""
    s_pad, h_pad = _round_up(S, 8), _round_up(H, 128)
    return (2 * in_itemsize * s_pad * h_pad        # state, double-buffered
            + 2 * 4 * 8 * _round_up(S, 128)        # (1,S) mask rows, dbl-buf
            + 2 * 4 * 8 * h_pad                    # (1,H) ctx rows, dbl-buf
            + 4 * s_pad * h_pad)                   # transient f32 temp


def _vmem_budgets():
    """(live-data tile budget, vmem_limit_bytes cap) per TPU generation.
    Conservative fallback is sized for v7x's 64 MiB physical VMEM."""
    try:
        phys = int(getattr(pltpu.get_tpu_info(), "vmem_capacity_bytes", 0) or 0)
    except Exception:
        phys = 0
    if phys >= (96 << 20):          # v5e / v6e: 128 MiB physical VMEM
        return 64 << 20, 96 << 20
    return 24 << 20, 48 << 20       # v7x (or unknown): 64 MiB physical VMEM


def _pick_tile_batch(B, S, H, in_itemsize, vmem_budget_bytes,
                     target_step_bytes=4 << 20, min_steps=4):
    """Batch-tile size: keep >= min_steps (and preferably an even number of)
    pipelined grid steps, each moving ~target_step_bytes of last_state, while
    the double-buffered VMEM footprint stays inside vmem_budget_bytes."""
    row_hbm = S * H * in_itemsize                   # real HBM bytes per row
    row_vmem = _row_vmem_bytes(S, H, in_itemsize)
    cap = max(1, vmem_budget_bytes // row_vmem)

    nsteps = max(min_steps, _cdiv(B * row_hbm, target_step_bytes))
    nsteps = min(nsteps, B)
    if nsteps % 2 and nsteps < B:
        nsteps += 1                                 # even grid for 2-TC parts
    tb = max(1, min(_cdiv(B, nsteps), cap, B))
    if tb >= 8:
        tb = (tb // 8) * 8
    # Best effort: keep the grid length even so both TensorCores on v7x get
    # the same number of steps.
    steps = _cdiv(B, tb)
    if steps % 2 and steps > 1:
        tb2 = max(1, _cdiv(B, steps + 1))
        if tb2 >= 8:
            tb2 = (tb2 // 8) * 8
        if _cdiv(B, tb2) % 2 == 0:
            tb = tb2
    return tb


@jax.jit
def attention_luong(last_state, attention_mask, weight):
    """last_state: (B, S, H); attention_mask: (B, S); weight: (1, H)."""
    B, S, H = last_state.shape
    in_it = jnp.dtype(last_state.dtype).itemsize

    budget, limit_cap = _vmem_budgets()
    tb = _pick_tile_batch(B, S, H, in_it, budget)
    grid = (_cdiv(B, tb),)

    # Declare enough scoped VMEM for the chosen tile (+ weight + headroom),
    # but never ask for (nearly) all of physical VMEM on v7x-class parts.
    vmem_need = tb * _row_vmem_bytes(S, H, in_it) + (1 << 20)
    vmem_limit = int(min(limit_cap, max(16 << 20, vmem_need + (8 << 20))))

    # Singleton middle dims so trailing block dims equal the full array dims
    # (layout-legal for any batch tile size); reshapes are metadata-only.
    mask3 = attention_mask.reshape(B, 1, S)

    # Note: when B % tb != 0 the padded rows of the last step compute on
    # undefined VMEM; results are discarded on (masked) writeback.
    ctx = pl.pallas_call(
        _attention_luong_kernel,
        out_shape=jax.ShapeDtypeStruct((B, 1, H), last_state.dtype),
        grid_spec=pltpu.PrefetchScalarGridSpec(
            num_scalar_prefetch=0,
            grid=grid,
            in_specs=[
                pl.BlockSpec((1, H), lambda b: (0, 0)),            # weight
                pl.BlockSpec((tb, 1, S), lambda b: (b, 0, 0)),     # mask
                pl.BlockSpec((tb, S, H), lambda b: (b, 0, 0)),     # last_state
            ],
            out_specs=pl.BlockSpec((tb, 1, H), lambda b: (b, 0, 0)),
        ),
        compiler_params=pltpu.CompilerParams(
            dimension_semantics=("parallel",),
            vmem_limit_bytes=vmem_limit,
        ),
    )(weight, mask3, last_state)

    # Seq broadcast (PyTorch .expand) kept for module-output fidelity; prefer
    # consuming `ctx` directly (or letting XLA fuse this) so the (B,S,H) copy
    # is not re-materialized in HBM by downstream code.
    encoder_hidden_states = jnp.broadcast_to(ctx, (B, S, H))
    encoding_mask = jnp.zeros((B, S), jnp.float32).at[:, 0].set(1.0)
    return encoder_hidden_states, encoding_mask


def attention_luong_ref(last_state, attention_mask, weight):
    """Pure-JAX reference mirroring the PyTorch forward."""
    mask_expanded = attention_mask.astype(jnp.float32)[:, :, None]
    masked = last_state * mask_expanded
    dot = jnp.einsum("bsh,h->bs", masked, weight[0])
    w = jax.nn.softmax(dot, axis=1)[:, None, :]                  # (B,1,S)
    ctx = jnp.matmul(w, masked)[:, 0, :]                         # (B,H)
    out = jnp.broadcast_to(ctx[:, None, :], last_state.shape)
    enc_mask = jnp.zeros(attention_mask.shape, jnp.float32).at[:, 0].set(1.0)
    return out, enc_mask


if __name__ == "__main__":
    B, S, H = 2, 8, 32  # attention_size = H

    key = jax.random.PRNGKey(0)
    k1, k2, k3 = jax.random.split(key, 3)

    last_state = jax.random.normal(k1, (B, S, H), dtype=jnp.float32)
    # binary attention mask, float (PyTorch applies .float() anyway)
    attention_mask = (jax.random.uniform(k2, (B, S)) > 0.3).astype(jnp.float32)
    # deterministic init for Linear(H, 1, bias=False).weight -> shape (1, H)
    bound = 1.0 / np.sqrt(H)
    weight = jax.random.uniform(k3, (1, H), dtype=jnp.float32,
                                minval=-bound, maxval=bound)

    out, enc_mask = attention_luong(last_state, attention_mask, weight)
    jax.block_until_ready((out, enc_mask))

    ref_out, ref_mask = attention_luong_ref(last_state, attention_mask, weight)
    np.testing.assert_allclose(np.asarray(out), np.asarray(ref_out),
                               rtol=1e-5, atol=1e-5)
    np.testing.assert_allclose(np.asarray(enc_mask), np.asarray(ref_mask))

    print("KERNEL_OK")
</pallas_src>

<mosaic_0001>
module attributes {stable_mosaic.version = 11 : i64} {
  func.func @_attention_luong_kernel(%arg0: i32, %arg1: memref<1x32xf32, #tpu.memory_space<vmem>>, %arg2: memref<1x1x8xf32, #tpu.memory_space<vmem>>, %arg3: memref<1x8x32xf32, #tpu.memory_space<vmem>>, %arg4: memref<1x1x32xf32, #tpu.memory_space<vmem>>) attributes {dimension_semantics = [#tpu.dimension_semantics<parallel>], iteration_bounds = array<i64: 2>, scalar_prefetch = 0 : i64, scratch_operands = 0 : i64, tpu.core_type = #tpu.core_type<tc>, window_params = [{pipeline_mode = #tpu.pipeline_mode<synchronous>, transform_indices = @transform_0, window_bounds = array<i64: 1, 32>}, {transform_indices = @transform_1, window_bounds = array<i64: 1, 1, 8>}, {transform_indices = @transform_2, window_bounds = array<i64: 1, 8, 32>}, {transform_indices = @transform_3, window_bounds = array<i64: 1, 1, 32>}]} {
    %c0 = arith.constant 0 : index
    %c0_0 = arith.constant 0 : index
    %c0_1 = arith.constant 0 : index
    %0 = vector.load %arg3[%c0, %c0_0, %c0_1] : memref<1x8x32xf32, #tpu.memory_space<vmem>>, vector<1x8x32xf32>
    %c0_2 = arith.constant 0 : index
    %c0_3 = arith.constant 0 : index
    %c0_4 = arith.constant 0 : index
    %1 = vector.load %arg2[%c0_2, %c0_3, %c0_4] : memref<1x1x8xf32, #tpu.memory_space<vmem>>, vector<1x1x8xf32>
    %2 = vector.shape_cast %1 : vector<1x1x8xf32> to vector<1x8xf32>
    %c0_5 = arith.constant 0 : index
    %c0_6 = arith.constant 0 : index
    %3 = vector.load %arg1[%c0_5, %c0_6] : memref<1x32xf32, #tpu.memory_space<vmem>>, vector<1x32xf32>
    %4 = vector.shape_cast %3 : vector<1x32xf32> to vector<1x1x32xf32>
    %5 = vector.broadcast %4 : vector<1x1x32xf32> to vector<1x8x32xf32>
    %6 = arith.mulf %0, %5 : vector<1x8x32xf32>
    %cst = arith.constant dense<0.000000e+00> : vector<1x8xf32>
    %7 = vector.multi_reduction <add>, %6, %cst [2] : vector<1x8x32xf32> to vector<1x8xf32>
    %8 = arith.mulf %2, %7 : vector<1x8xf32>
    %cst_7 = arith.constant dense<0xFF800000> : vector<1xf32>
    %9 = vector.multi_reduction <maximumf>, %8, %cst_7 [1] : vector<1x8xf32> to vector<1xf32>
    %10 = vector.shape_cast %9 : vector<1xf32> to vector<1x1xf32>
    %11 = vector.broadcast %10 : vector<1x1xf32> to vector<1x8xf32>
    %12 = arith.subf %8, %11 : vector<1x8xf32>
    %13 = math.exp %12 : vector<1x8xf32>
    %cst_8 = arith.constant dense<0.000000e+00> : vector<1xf32>
    %14 = vector.multi_reduction <add>, %13, %cst_8 [1] : vector<1x8xf32> to vector<1xf32>
    %15 = vector.shape_cast %14 : vector<1xf32> to vector<1x1xf32>
    %16 = arith.mulf %13, %2 : vector<1x8xf32>
    %17 = vector.shape_cast %16 : vector<1x8xf32> to vector<1x8x1xf32>
    %18 = vector.broadcast %17 : vector<1x8x1xf32> to vector<1x8x32xf32>
    %19 = arith.mulf %0, %18 : vector<1x8x32xf32>
    %cst_9 = arith.constant dense<0.000000e+00> : vector<1x32xf32>
    %20 = vector.multi_reduction <add>, %19, %cst_9 [1] : vector<1x8x32xf32> to vector<1x32xf32>
    %21 = tpu.reciprocal %15 : vector<1x1xf32> -> vector<1x1xf32>
    %22 = vector.broadcast %21 : vector<1x1xf32> to vector<1x32xf32>
    %23 = arith.mulf %20, %22 : vector<1x32xf32>
    %24 = vector.shape_cast %23 : vector<1x32xf32> to vector<1x1x32xf32>
    %c0_10 = arith.constant 0 : index
    %c0_11 = arith.constant 0 : index
    %c0_12 = arith.constant 0 : index
    %25 = vector.load %arg4[%c0_10, %c0_11, %c0_12] : memref<1x1x32xf32, #tpu.memory_space<vmem>>, vector<1x1x32xf32>
    tpu.vector_store %arg4[%c0_10, %c0_11, %c0_12], %24 {strides = array<i32>} : memref<1x1x32xf32, #tpu.memory_space<vmem>>, vector<1x1x32xf32>,
    return
  }
  func.func @transform_0(%arg0: i32) -> (i32, i32) {
    %c0_i32 = arith.constant 0 : i32
    %c0_i32_0 = arith.constant 0 : i32
    %c0_i32_1 = arith.constant 0 : i32
    return %c0_i32, %c0_i32_0 : i32, i32
  }
  func.func @transform_1(%arg0: i32) -> (i32, i32, i32) {
    %c0_i32 = arith.constant 0 : i32
    %c0_i32_0 = arith.constant 0 : i32
    %c0_i32_1 = arith.constant 0 : i32
    return %arg0, %c0_i32, %c0_i32_0 : i32, i32, i32
  }
  func.func @transform_2(%arg0: i32) -> (i32, i32, i32) {
    %c0_i32 = arith.constant 0 : i32
    %c0_i32_0 = arith.constant 0 : i32
    %c0_i32_1 = arith.constant 0 : i32
    return %arg0, %c0_i32, %c0_i32_0 : i32, i32, i32
  }
  func.func @transform_3(%arg0: i32) -> (i32, i32, i32) {
    %c0_i32 = arith.constant 0 : i32
    %c0_i32_0 = arith.constant 0 : i32
    %c0_i32_1 = arith.constant 0 : i32
    return %arg0, %c0_i32, %c0_i32_0 : i32, i32, i32
  }
}

</mosaic_0001>

<bundles_post_ra>
// kernel: attention_luong.1
= control target key start
LH: loop header
LB: loop body
LE: loop exit
PB: predicated region body
PF: predicated region fallthrough
CT: control target
= control target key end

     0   :  { %8 = vsyncpa [#allocation3], 0  ;;  %s685_s0 = inlined_call_operand.vmem [shape: f32[1,32], index: 0, kind: input, shape index: {}]   ;;  %s686_s1 = inlined_call_operand.vmem [shape: f32[2,1,8], index: 1, kind: input, shape index: {}]   ;;  %s687_s2 = inlined_call_operand.hbm [shape: f32[2,8,32], index: 2, kind: input, shape index: {}]   ;;  %s688_s3 = inlined_call_operand.vmem [shape: f32[2,1,32], index: 3, kind: output, shape index: {}]  }
   0x1   :  { %10 = vsyncpa [#allocation3 + $0x1], 0  ;;  %s562_s12 = smov 0   ;;  %s564_s13 = smov 0  }
   0x2   :  { %s566_s14 = smov 0   ;;  %s568_s15 = smov 0  }
   0x3 LB: > { %s581_s16 = sadd.s32 4294967295, %s537_s15   ;;  %s584_s17 = sadd.s32 1, %s537_s15   ;;  %s537_s15 = sphi %s568_s15, %s696_s15   ;;  %s533_s14 = sphi %s566_s14, %s695_s14   ;;  %s529_s13 = sphi %s564_s13, %s694_s13   ;;  %s525_s12 = sphi %s562_s12, %s693_s12  }
   0x4   : > { %s67_s18 = ssub.s32 %s537_s15, %s584_s17  ;;  %s70_s19 = sadd.s32 1, %s533_s14 }
   0x5   : > { %p68_p0 = scmp.eq.s32.totalorder %s67_s18, 0  ;;  %p77_p1 = scmp.ne.s32.totalorder %s533_s14, %s529_s13 }
   0x6   : > { %p78_p2 = scmp.eq.s32.totalorder %s537_s15, 0  ;;  %p83_p3 = scmp.ne.s32.totalorder %s529_s13, %s525_s12 }
   0x7   : > { %s594_s20 = scalar_select %p68_p0, %s533_s14, %s70_s19  }
   0x8   : > { %p79_p4 = por %p78_p2, %p77_p1  ;;  %p84_p5 = scmp.eq.s32.totalorder %s581_s16, 0 }
   0x9   : > { %p433_p6 = scmp.lt.s32.totalorder %s537_s15, 2  ;;  %s142_s22 = sand.u32 1, %s533_s14  }
   0xa   : > { %p598_p7 = por %p84_p5, %p83_p3  ;;  %s420_s23 = sshll.u32 %s142_s22, 3 }
   0xb   : > { %s421_s24 = sshll.u32 %s537_s15, 7  ;;  %s146_s28 = scalar_lea.vmem [#allocation2], %s420_s23 }
   0xc   : > { %s607_s27 = scalar_lea.hbm %s687_s2, %s421_s24  ;;  %s153_s29 = sshll.u32 %s146_s28, 4  ;;  %s609_s29 = int_to_ptr.vmem [resolvable:$true] %s153_s29 }
   0xd   : > { %p611_p8 = pnand %p433_p6, %p79_p4  ;;  %s143_s4 = scalar_lea.sflag [#allocation3], %s142_s22 }
   0xe   : > { %s473_s5 = scalar_lea.hbm %s607_s27, 128  ;;  %s478_s8 = scalar_lea.hbm %s687_s2, 256 }
   0xf   : > { %p474_p11 = scmp.ne.s32.totalorder %s607_s27, %s473_s5  ;;  %p475_p12 = pneg %p611_p8 }
  0x10   : > { %p479_p1 = scmp.lt.u32.totalorder %s607_s27, %s687_s2  ;;  %p480_p2 = scmp.lt.u32.totalorder %s478_s8, %s473_s5 }
  0x11   : > { %p476_p13 = pnand %p475_p12, %p474_p11  ;;  %p482_p4 = scmp.lt.u32.totalorder %s473_s5, %s607_s27 }
  0x12   : > { %p481_p3 = por %p480_p2, %p479_p1 }
  0x13   : > { %p477_p0 = pneg %p476_p13 }
  0x14   : > { %p483_p5 = por %p482_p4, %p481_p3 }
  0x16   : > { %p484_p6 = pnand %p483_p5, %p477_p0 }
  0x18   : > { %487 = shalt.err (!%p484_p6)
}
  0x19   : > { %s488_s11 = scalar_lea.vmem %s609_s29, 128  ;;  %s539_s12 = smov [#allocation2]  }
  0x1a   : > { %p489_p11 = scmp.ne.s32.totalorder %s609_s29, %s488_s11  ;;  %s493_s18 = sshll.u32 %s539_s12, 4  ;;  %s494_s18 = int_to_ptr.vmem [resolvable:$false] %s493_s18 }
  0x1b   : > { %s495_s19 = scalar_lea.vmem %s494_s18, 256  ;;  %p496_p10 = scmp.lt.s32.totalorder %s609_s29, %s494_s18 }
  0x1c   : > { %p491_p13 = pnand %p489_p11, %p475_p12  ;;  %p497_p1 = scmp.lt.s32.totalorder %s495_s19, %s488_s11 }
  0x1e   : > { %p492_p9 = pneg %p491_p13  ;;  %p498_p2 = por %p497_p1, %p496_p10 }
  0x20   : > { %p499_p3 = pnand %p498_p2, %p492_p9 }
  0x22   : > { %502 = shalt.err (!%p499_p3)
}
  0x23   : > { %432 = dma.hbm_to_vmem [thread:$0]  (!%p611_p8), %s607_s27, 128, %s609_s29, %s143_s4  }
  0x24   : > { %p691_p0 = scmp.lt.s32.totalorder %s537_s15, 3  ;;  %p692_p4 = scmp.ge.s32.totalorder %s537_s15, 1 }
  0x26   : > { %p159_p12 = pnand %p692_p4, %p691_p0 }
  0x27   : > { %s164_s22 = sand.u32 (!%p159_p12), 1, %s529_s13  }
  0x28   : > { %162 = sbr.rel (%p159_p12) target bundleno = 667 (0x29b), region = 32  ;;  %s423_s23 = sshll.u32 (!%p159_p12), %s164_s22, 3 }
  0x29   : > { %s165_s24 = scalar_lea.sflag (!%p159_p12), [#allocation3], %s164_s22  ;;  %s168_s25 = scalar_lea.vmem (!%p159_p12), [#allocation2], %s423_s23 }
  0x2f   : > { %520 = dma.done.wait (%p598_p7), %s165_s24, 128  }
  0x30   : > { %522 = vsyncadd (%p598_p7), %s165_s24, 4294967168  ;;  %v651_v0 = vld [vmem:[%s168_s25] sm:$0xff]  ;;  %vm208_vm0 = vcmask 261120   ;;  %v540_v4 = vmov 0   ;;  %v213_v5 = vlaneseq  ;;  %v541_v9 = vmov 1966171168  }
  0x31   : > { %v424_v1 = vld [vmem:[%s685_s0] ss:$0 sm:$0xff]  ;;  %468 = vset.pattern.permute.xlu0 %v540_v4  ;;  %v250_v10 = vunpack.c.l.s4 %v541_v9  ;;  %p192_p7 = scmp.lt.s32.totalorder %s581_s16, 1  ;;  %vm319_vm1 = vcmask 57344   ;;  %vm347_vm2 = vcmask 253952  }
  0x32   : > { %v207_v2 = vmul.f32 %v424_v1, %v651_v0  ;;  %v214_v6 = vshrl.u32 %v213_v5, 7  ;;  %v298_v7 = vand.u32 127, %v213_v5 }
  0x33   : > { %v251_v11 = vunpack.c.0.s8 %v250_v10  ;;  %s698_s16 = smov (!%p192_p7, %s581_s16), 1 }
  0x34   : > { %v209_v3 = vsel %vm208_vm0, %v207_v2, 0.0  ;;  %v301_v8 = vsub.s32 %v298_v7, %v214_v6  ;;  %v215_v12 = vsub.s32 0, %v214_v6  ;;  %v219_v13 = vsub.s32 1, %v214_v6  ;;  %s194_s27 = scalar_lea.vmem %s686_s1, %s698_s16  ;;  %s197_s4 = scalar_lea.vmem %s688_s3, %s698_s16 }
  0x35   : > { %210 = vadd.xlane.f32.xlu0 %v209_v3  ;;  %v223_v14 = vsub.s32 2, %v214_v6  ;;  %v227_v15 = vsub.s32 3, %v214_v6  ;;  %v231_v16 = vsub.s32 4, %v214_v6  ;;  %v235_v17 = vsub.s32 5, %v214_v6  ;;  %v199_v46 = vld [vmem:[%s194_s27] sm:$0x1] }
  0x36   : > { %v239_v18 = vsub.s32 6, %v214_v6  ;;  %v243_v19 = vsub.s32 7, %v214_v6  ;;  %v254_v21 = vsub.s32 %v251_v11, %v214_v6 }
  0xc2   : > { %v211_v20 = vpop.xlane.xlu0 %210 }
  0xc3   : > { %v216_v22 = vrot.slane %v211_v20, %v215_v12  ;;  %v220_v23 = vrot.slane %v211_v20, %v219_v13  ;;  %v224_v24 = vrot.slane %v211_v20, %v223_v14  ;;  %v228_v25 = vrot.slane %v211_v20, %v227_v15 }
  0xc4   : > { %v232_v26 = vrot.slane %v211_v20, %v231_v16  ;;  %v236_v27 = vrot.slane %v211_v20, %v235_v17  ;;  %v240_v28 = vrot.slane %v211_v20, %v239_v18  ;;  %v244_v29 = vrot.slane %v211_v20, %v243_v19 }
  0xc5   : > { %v245_v30 = vcombine.low %v216_v22, %v220_v23  ;;  %v246_v31 = vcombine.low %v224_v24, %v228_v25 }
  0xc6   : > { %v247_v32 = vcombine.low %v232_v26, %v236_v27  ;;  %v248_v33 = vcombine.low %v240_v28, %v244_v29 }
  0xc7   : > { %v255_v34 = vrot.slane %v245_v30, %v254_v21  ;;  %v262_v35 = vrot.slane %v246_v31, %v254_v21 }
  0xc8   : > { %v269_v36 = vrot.slane %v247_v32, %v254_v21  ;;  %v276_v37 = vrot.slane %v248_v33, %v254_v21 }
  0xc9   : > { %v277_v38 = vcombine.low %v255_v34, %v262_v35 }
  0xca   : > { %v278_v39 = vcombine.low %v269_v36, %v276_v37 }
  0xcb   : > { %v285_v40 = vrot.slane %v277_v38, %v254_v21 }
  0xcc   : > { %v292_v41 = vrot.slane %v278_v39, %v254_v21 }
  0xce   : > { %v293_v42 = vcombine.low %v285_v40, %v292_v41 }
  0xd0   : > { %295 = vperm.xlu0 %468, %v293_v42  }
 0x14f   : > { %v296_v43 = vpop.permute.xlu0 %295 }
 0x150   : > { %v302_v44 = vrot.slane %v296_v43, %v301_v8 }
 0x152   : > { %v309_v45 = vrot.slane %v302_v44, %v254_v21 }
 0x154   : > { %v316_v47 = vrot.slane %v309_v45, %v254_v21 }
 0x156   : > { %v318_v48 = vmul.f32 %v316_v47, %v199_v46 }
 0x158   : > { %v320_v49 = vsel %vm319_vm1, %v318_v48, -inf }
 0x159   : > { %321 = vmax.xlane.f32.xlu1 %v320_v49 }
 0x1e6   : > { %v322_v50 = vpop.xlane.xlu1 %321 }
 0x1e7   : > { %v323_v51 = vsub.f32 %v318_v48, %v322_v50 }
 0x1e9   : > { %v324_v52 = vmul.f32 1.442695, %v323_v51 }
 0x1eb   : > { %469 = vpow2.f32 %v324_v52 }
 0x1f5   : > { %v470_v53 = vpop.eup %469 }
 0x1f6   : > { %v326_v54 = vsel %vm319_vm1, %v470_v53, 0.0  ;;  %v329_v55 = vmul.f32 %v470_v53, %v199_v46 }
 0x1f7   : > { %327 = vadd.xlane.f32.xlu1 %v326_v54 }
 0x1f8   : > { %v333_v56 = vrot.slane %v329_v55, %v215_v12 }
 0x208   : > { %335 = vbcast.lane.b32.xlu1 %v333_v56, 256 }
 0x284   : > { %v328_v57 = vpop.xlane.xlu1 %327 }
 0x285   : > { %471 = vrcp.f32 %v328_v57 }
 0x288   : > { %v336_v58 = vpop.permute.xlu1 %335 }
 0x289   : > { %v337_v59 = vmul.f32 %v336_v58, %v651_v0 }
 0x28b   : > { %v338_v60 = vsel %vm208_vm0, %v337_v59, 0.0 }
 0x28c   : > { %v339_v61 = vrot.slane %v338_v60, 4 }
 0x28e   : > { %v340_v62 = vadd.f32 %v339_v61, %v338_v60 }
 0x28f   : > { %v472_v4 = vpop.eup %471 }
 0x290   : > { %v341_v63 = vrot.slane %v340_v62, 2 }
 0x292   : > { %v342_v1 = vadd.f32 %v341_v63, %v340_v62 }
 0x294   : > { %v343_v2 = vrot.slane %v342_v1, 1 }
 0x296   : > { %v344_v3 = vadd.f32 %v343_v2, %v342_v1 }
 0x298   : > { %v346_v5 = vmul.f32 %v472_v4, %v344_v3 }
 0x29a   : > { %348 = vst.msk [vmem:[%s197_s4] sm:$0x1] %vm347_vm2, %v346_v5 }
 0x29b PF: > { %p13_p8 = scmp.ge.s32.totalorder %s584_s17, 4   ;;  %s693_s12 = smov %s529_s13 }
 0x29c   : > { %s694_s13 = smov %s533_s14  ;;  %s695_s14 = smov %s594_s20 }
 0x29d   : > { %s696_s15 = smov %s584_s17  ;;  %15 = sbr.rel (!%p13_p8) target bundleno = 3 (0x3), region = 75 }
 0x2a4   :  { %366 = vsyncpa [#allocation3], 1 }
 0x2a5   :  { %368 = vsyncpa [#allocation3 + $0x1], 1 }

</bundles_post_ra>
